<compile_context>
chip_gen: v7x
topology: tpu7x:2x2x1
jax: 0.10.0
libtpu: 0.0.40
codegen_flags: <defaults>
</compile_context>

<pallas_src>
import functools

import jax
import jax.numpy as jnp
from jax import lax
from jax.experimental import pallas as pl
from jax.experimental.pallas import tpu as pltpu


def _policy_net_kernel(state_dim, action_dim, x_ref, params_ref, out_ref):
    # Single VMEM slab holding all parameters; static slices of the loaded tile.
    p = params_ref[...]                                        # (S+1+A+1, H) f32
    w1 = p[0:state_dim, :]                                     # (S, H)
    b1 = p[state_dim:state_dim + 1, :]                         # (1, H)
    w2_t = p[state_dim + 1:state_dim + 1 + action_dim, :]      # (A, H)  == W2ᵀ
    b2 = p[state_dim + 1 + action_dim:state_dim + 2 + action_dim, 0:action_dim]  # (1, A)

    # --- fc1 + ReLU (all f32, f32 accumulation) ---
    h = jnp.dot(x_ref[...], w1, preferred_element_type=jnp.float32)   # (B, H)
    h = jnp.maximum(h + b1, 0.0)

    # --- fc2: contract hidden dim of h against hidden dim of W2ᵀ (no transpose op) ---
    logits = lax.dot_general(
        h, w2_t,
        dimension_numbers=(((1,), (1,)), ((), ())),
        preferred_element_type=jnp.float32,
    )                                                                  # (B, A)
    logits = logits + b2

    # --- softmax over dim=1 (numerically stable) ---
    m = jnp.max(logits, axis=-1, keepdims=True)
    e = jnp.exp(logits - m)
    denom = jnp.sum(e, axis=-1, keepdims=True)
    out_ref[...] = (e * pl.reciprocal(denom, approx=False)).astype(out_ref.dtype)


def pack_params(w1, b1, w2, b2):
    """Pack (w1:(S,H), b1:(H,), w2:(H,A), b2:(A,)) into one f32 slab (S+1+A+1, H).

    Done once at parameter-creation time (not per forward call)."""
    state_dim, hidden = w1.shape
    action_dim = w2.shape[1]
    rows = state_dim + 1 + action_dim + 1
    slab = jnp.zeros((rows, hidden), dtype=jnp.float32)
    slab = slab.at[0:state_dim, :].set(w1.astype(jnp.float32))
    slab = slab.at[state_dim, :].set(b1.astype(jnp.float32))
    slab = slab.at[state_dim + 1:state_dim + 1 + action_dim, :].set(
        w2.T.astype(jnp.float32))
    slab = slab.at[state_dim + 1 + action_dim, 0:action_dim].set(
        b2.astype(jnp.float32))
    return slab


def policy_net_forward(x, packed_params, state_dim, action_dim):
    """x: (B, state_dim) f32; packed_params: slab from pack_params().
       Returns (B, action_dim) f32 probabilities (rows sum to 1)."""
    B = x.shape[0]
    vmem_spec = pl.BlockSpec(memory_space=pltpu.MemorySpace.VMEM)

    kernel = functools.partial(_policy_net_kernel, state_dim, action_dim)

    # Tiny shapes -> grid=(): whole arrays resident in VMEM for the single
    # invocation; exactly two input DMAs (x + params), one output DMA.
    return pl.pallas_call(
        kernel,
        out_shape=jax.ShapeDtypeStruct((B, action_dim), jnp.float32),
        in_specs=[vmem_spec, vmem_spec],
        out_specs=vmem_spec,
    )(x.astype(jnp.float32), packed_params)


def _ref_forward_f32(x, w1, b1, w2, b2):
    """Pure-f32 reference (exact PyTorch semantics)."""
    h = jnp.maximum(x @ w1 + b1, 0.0)
    logits = h @ w2 + b2
    return jax.nn.softmax(logits, axis=1)


if __name__ == "__main__":
    # Small shapes consistent with a policy net: state_dim=4, hidden=32, action_dim=2.
    B, state_dim, hidden_dim, action_dim = 8, 4, 32, 2

    key = jax.random.PRNGKey(0)
    kx, k1, kb1, k2, kb2 = jax.random.split(key, 5)

    x = jax.random.normal(kx, (B, state_dim), dtype=jnp.float32)
    # Deterministic synthetic weights (stored as (in, out), i.e. torch weight.T).
    w1 = jax.random.normal(k1, (state_dim, hidden_dim), dtype=jnp.float32) * (1.0 / jnp.sqrt(state_dim))
    b1 = jax.random.normal(kb1, (hidden_dim,), dtype=jnp.float32) * 0.01
    w2 = jax.random.normal(k2, (hidden_dim, action_dim), dtype=jnp.float32) * (1.0 / jnp.sqrt(hidden_dim))
    b2 = jax.random.normal(kb2, (action_dim,), dtype=jnp.float32) * 0.01

    # One-time parameter packing (no per-call casts/reshapes).
    packed = jax.block_until_ready(pack_params(w1, b1, w2, b2))

    probs = policy_net_forward(x, packed, state_dim, action_dim)
    probs = jax.block_until_ready(probs)

    assert probs.shape == (B, action_dim)
    # Softmax self-normalizes in f32 -> rows sum to 1 tightly.
    assert jnp.allclose(jnp.sum(probs, axis=1), 1.0, atol=1e-5)

    # Tight check against the pure-f32 (PyTorch-equivalent) reference — the
    # kernel is now f32 end-to-end.
    ref = _ref_forward_f32(x, w1, b1, w2, b2)
    assert jnp.allclose(probs, ref, atol=1e-5, rtol=1e-5)

    print("KERNEL_OK")
</pallas_src>

<mosaic_0001>
module attributes {stable_mosaic.version = 11 : i64} {
  func.func @_policy_net_kernel(%arg0: memref<8x4xf32, #tpu.memory_space<vmem>>, %arg1: memref<8x32xf32, #tpu.memory_space<vmem>>, %arg2: memref<8x2xf32, #tpu.memory_space<vmem>>) attributes {dimension_semantics = [], scalar_prefetch = 0 : i64, scratch_operands = 0 : i64, tpu.core_type = #tpu.core_type<tc>} {
    %c0 = arith.constant 0 : index
    %c0_0 = arith.constant 0 : index
    %0 = vector.load %arg1[%c0, %c0_0] : memref<8x32xf32, #tpu.memory_space<vmem>>, vector<8x32xf32>
    %1 = vector.extract_strided_slice %0 {offsets = [0, 0], sizes = [4, 32], strides = [1, 1]} : vector<8x32xf32> to vector<4x32xf32>
    %2 = vector.extract_strided_slice %0 {offsets = [4, 0], sizes = [1, 32], strides = [1, 1]} : vector<8x32xf32> to vector<1x32xf32>
    %3 = vector.extract_strided_slice %0 {offsets = [5, 0], sizes = [2, 32], strides = [1, 1]} : vector<8x32xf32> to vector<2x32xf32>
    %4 = vector.extract_strided_slice %0 {offsets = [7, 0], sizes = [1, 2], strides = [1, 1]} : vector<8x32xf32> to vector<1x2xf32>
    %c0_1 = arith.constant 0 : index
    %c0_2 = arith.constant 0 : index
    %5 = vector.load %arg0[%c0_1, %c0_2] : memref<8x4xf32, #tpu.memory_space<vmem>>, vector<8x4xf32>
    %cst = arith.constant dense<0.000000e+00> : vector<8x32xf32>
    %6 = tpu.matmul %5, %1, %cst {dimension_numbers = #tpu.dot_dimension_numbers<[1], [0], [0], [1], [0, 0, 1, 1], [], []>} : vector<8x4xf32>, vector<4x32xf32>, vector<8x32xf32> -> vector<8x32xf32>
    %7 = vector.broadcast %2 : vector<1x32xf32> to vector<8x32xf32>
    %8 = arith.addf %6, %7 : vector<8x32xf32>
    %cst_3 = arith.constant 0.000000e+00 : f32
    %9 = vector.broadcast %cst_3 : f32 to vector<8x32xf32>
    %10 = arith.maximumf %8, %9 : vector<8x32xf32>
    %cst_4 = arith.constant dense<0.000000e+00> : vector<8x2xf32>
    %11 = tpu.matmul %10, %3, %cst_4 {dimension_numbers = #tpu.dot_dimension_numbers<[1], [1], [0], [0], [0, 0, 1, 0], [], []>} : vector<8x32xf32>, vector<2x32xf32>, vector<8x2xf32> -> vector<8x2xf32>
    %12 = vector.broadcast %4 : vector<1x2xf32> to vector<8x2xf32>
    %13 = arith.addf %11, %12 : vector<8x2xf32>
    %cst_5 = arith.constant dense<0xFF800000> : vector<8xf32>
    %14 = vector.multi_reduction <maximumf>, %13, %cst_5 [1] : vector<8x2xf32> to vector<8xf32>
    %15 = vector.shape_cast %14 : vector<8xf32> to vector<8x1xf32>
    %16 = vector.broadcast %15 : vector<8x1xf32> to vector<8x2xf32>
    %17 = arith.subf %13, %16 : vector<8x2xf32>
    %18 = math.exp %17 : vector<8x2xf32>
    %cst_6 = arith.constant dense<0.000000e+00> : vector<8xf32>
    %19 = vector.multi_reduction <add>, %18, %cst_6 [1] : vector<8x2xf32> to vector<8xf32>
    %20 = vector.shape_cast %19 : vector<8xf32> to vector<8x1xf32>
    %21 = tpu.reciprocal %20 : vector<8x1xf32> -> vector<8x1xf32>
    %22 = vector.broadcast %21 : vector<8x1xf32> to vector<8x2xf32>
    %23 = arith.mulf %18, %22 : vector<8x2xf32>
    %c0_7 = arith.constant 0 : index
    %c0_8 = arith.constant 0 : index
    %24 = vector.load %arg2[%c0_7, %c0_8] : memref<8x2xf32, #tpu.memory_space<vmem>>, vector<8x2xf32>
    tpu.vector_store %arg2[%c0_7, %c0_8], %23 {strides = array<i32>} : memref<8x2xf32, #tpu.memory_space<vmem>>, vector<8x2xf32>,
    return
  }
}

</mosaic_0001>

<bundles_post_ra>
// kernel: tpu_custom_call.1
= control target key start
LH: loop header
LB: loop body
LE: loop exit
PB: predicated region body
PF: predicated region fallthrough
CT: control target
= control target key end

     0   :  { %vm21_vm0 = vcmask 1043456   ;;  %vm17_vm1 = vcmask 31744   ;;  %v218_v0 = vmov 0.0   ;;  %vm219_vm2 = vmmov 0   ;;  %s247_s1 = inlined_call_operand.vmem [shape: f32[8,32], index: 1, kind: input, shape index: {}]   ;;  %s248_s0 = inlined_call_operand.vmem [shape: f32[8,4], index: 0, kind: input, shape index: {}]   ;;  %s249_s2 = inlined_call_operand.vmem [shape: f32[8,2], index: 2, kind: output, shape index: {}]  }
   0x1   :  { %202 = vmatprep.subr.mxu0 %v218_v0  ;;  %v11_v1 = vld [vmem:[%s247_s1] sm:$0xff]  ;;  %204 = vmatprep.mubr.msk.f32.mxu0 %vm219_vm2, %v218_v0  ;;  %vm101_vm3 = vcmask 261120   ;;  %v13_v4 = vlaneseq  ;;  %vm177_vm4 = vcmask 15360  }
   0x2   :  { %v12_v2 = vld [vmem:[%s248_s0] sm:$0xff]  ;;  %203 = vmatpush3.msk.msra.mxu0 %vm21_vm0, %v11_v1  ;;  %207 = vmatprep.subr.mxu1 %v218_v0  ;;  %v100_v3 = vrot.slane %v11_v1, 5 }
   0x3   :  { %205 = vmatmul.mubr.msk.f32.vlgmr.msra.gmra.mrb[0].mxu0 %vm17_vm1, %v12_v2  ;;  %209 = vmatprep.mubr.msk.f32.mxu1 %vm219_vm2, %v218_v0  ;;  %v14_v5 = vshrl.u32 %v13_v4, 7 }
   0x4   :  { %208 = vmatpush3.xpose.msk.msra.mxu1 %vm101_vm3, %v100_v3 }
   0x5   :  { %v15_v6 = vsub.s32 4, %v14_v5  ;;  %v98_v12 = vsub.s32 7, %v14_v5 }
   0x7   :  { %v16_v7 = vrot.slane %v11_v1, %v15_v6  ;;  %v99_v13 = vrot.slane %v11_v1, %v98_v12 }
  0xd6   :  { %v91_v8 = vpop.f32.mrb[0].mxu0 }
  0xd7   :  { %v92_v9 = vadd.f32 %v91_v8, %v16_v7  ;;  %v206_v10 = vpop.f32.mrb[1].mxu0 }
  0xd9   :  { %v95_v11 = vmax.f32 %v92_v9, 0.0 }
  0xdb   :  { %210 = vmatmul.mubr.msk.f32.vlgmr.msra.gmra.mrb[0].mxu1 %vm101_vm3, %v95_v11 }
 0x1ae   :  { %v173_v14 = vpop.f32.mrb[0].mxu1 }
 0x1af   :  { %v174_v15 = vadd.f32 %v173_v14, %v99_v13  ;;  %v211_v16 = vpop.f32.mrb[1].mxu1 }
 0x1b1   :  { %v178_v17 = vsel %vm177_vm4, %v174_v15, -inf }
 0x1b2   :  { %179 = vmax.xlane.f32.xlu0 %v178_v17 }
 0x23f   :  { %v180_v18 = vpop.xlane.xlu0 %179 }
 0x240   :  { %v181_v19 = vsub.f32 %v174_v15, %v180_v18 }
 0x242   :  { %v182_v20 = vmul.f32 1.442695, %v181_v19 }
 0x244   :  { %214 = vpow2.f32 %v182_v20 }
 0x24e   :  { %v215_v21 = vpop.eup %214 }
 0x24f   :  { %v184_v22 = vsel %vm177_vm4, %v215_v21, 0.0 }
 0x250   :  { %185 = vadd.xlane.f32.xlu0 %v184_v22 }
 0x2dd   :  { %v186_v23 = vpop.xlane.xlu0 %185 }
 0x2de   :  { %216 = vrcp.f32 %v186_v23 }
 0x2e8   :  { %v217_v24 = vpop.eup %216 }
 0x2e9   :  { %v188_v25 = vmul.f32 %v217_v24, %v215_v21 }
 0x2eb   :  { %189 = vst.msk [vmem:[%s249_s2] sm:$0xff] %vm177_vm4, %v188_v25 }

</bundles_post_ra>
